<compile_context>
chip_gen: v7x
topology: tpu7x:2x2x1
jax: 0.10.0
libtpu: 0.0.40
codegen_flags: <defaults>
</compile_context>

<pallas_src>
import jax
import jax.numpy as jnp
from jax.experimental import pallas as pl
from jax.experimental.pallas import tpu as pltpu

_LANE = 128
_MAX_TC = 32768   # lanes per block; ~128 KiB/row f32 is already full DMA efficiency


def _add_pe_kernel(x_ref, pe_ref, o_ref):
    # x_ref: (tb, tc) in x dtype; pe_ref: (1, tc) in out dtype (sublane-broadcast).
    # Single VPU add (plus a free convert when x dtype != out dtype).
    o_ref[...] = x_ref[...].astype(o_ref.dtype) + pe_ref[...]


def _device_tuning():
    """(target_block_bytes, vmem_limit_bytes, ensure_two_tiles) per TPU generation."""
    kind = ""
    try:
        kind = jax.devices()[0].device_kind.lower()
    except Exception:
        pass
    if "v7" in kind or "7x" in kind:
        # ~3.2 TB/s HBM -> fixed per-step cost dominates sooner: big blocks and a
        # raised scoped-VMEM limit (40 MiB << 64 MiB physical). 2 TCs -> >=2 tiles.
        return 8 << 20, 40 << 20, True
    if "v5e" in kind or "v5 lite" in kind or "v5lite" in kind:
        # Default scoped VMEM is only 16 MiB; 2 MiB blocks (~9 MiB footprint)
        # already capture nearly all the win at ~0.82 TB/s.
        return 2 << 20, None, False
    # v6e / v4 / unknown: 4 MiB blocks; raise the limit so the ~17 MiB
    # double-buffered footprint is safe even if the default scoped limit is low.
    return 4 << 20, 40 << 20, False


def learnable_positional_encoding_forward(x, positional_encoding, *,
                                          target_block_bytes=None,
                                          vmem_limit_bytes=None,
                                          min_pallas_bytes=1 << 20):
    """x: (B, S, D), positional_encoding: (max_seq_length, D). Returns x + pe[:S]."""
    B, S, D = x.shape
    N = S * D

    # PyTorch promotion semantics: x + f32 Parameter computes/returns the
    # promoted dtype (so bf16 x -> f32 out), instead of downcasting pe to x.dtype.
    out_dtype = jnp.result_type(x.dtype, positional_encoding.dtype)
    pe = positional_encoding[:S, :].astype(out_dtype)

    x_item = jnp.dtype(x.dtype).itemsize
    out_item = jnp.dtype(out_dtype).itemsize
    budget_item = max(x_item, out_item)             # sizes the per-block byte budget
    sublane = max(8, 32 // min(x_item, out_item))   # native sublane tile: 8 f32, 16 bf16, 32 int8

    # --- tiny-input fast path -------------------------------------------------
    # pallas_call launch + grid setup costs multiple microseconds; XLA's fused
    # add is strictly cheaper for small activations (the common PE-layer case).
    if B * N * budget_item < min_pallas_bytes:
        return (x.astype(out_dtype) + pe).astype(out_dtype)

    tuned_block, tuned_vmem, ensure_two_tiles = _device_tuning()
    if target_block_bytes is None:
        target_block_bytes = tuned_block
    if vmem_limit_bytes is None:
        vmem_limit_bytes = tuned_vmem

    # Lane-dense flatten (x reshape is a free bitcast; pe slice/cast is tiny).
    x2 = x.reshape(B, N)
    pe2 = pe.reshape(1, N)

    # --- tile selection ---------------------------------------------------------
    # Cap lanes per block and grow ROWS to fill the byte budget: keeps the (1, tc)
    # pe block (and its double-buffer) small while x/out blocks grow for free.
    if N <= _MAX_TC:
        tc = N                      # full last dim (legal even if N % 128 != 0;
                                    # odd N -> masked tail stores, still correct)
    else:
        tc = _MAX_TC                # multiple of 128; ragged tail block is masked
    rows_target = max(1, target_block_bytes // (tc * budget_item))
    if B <= rows_target or B <= sublane:
        tb = B                      # full batch dim (always legal)
    else:
        tb = max(sublane, (min(rows_target, B) // sublane) * sublane)

    # v7x megacore: make sure there are >=2 grid tiles along a "parallel" axis so
    # both TensorCores get work (irrelevant on single-TC v5e/v6e).
    if ensure_two_tiles and pl.cdiv(N, tc) * pl.cdiv(B, tb) < 2:
        if B >= 2 * sublane:
            tb = ((pl.cdiv(B, 2) + sublane - 1) // sublane) * sublane
        elif tc == N and N >= 2 * _LANE:
            tc = ((pl.cdiv(N, 2) + _LANE - 1) // _LANE) * _LANE

    grid = (pl.cdiv(N, tc), pl.cdiv(B, tb))   # column tiles outer, batch tiles inner

    cp_kwargs = dict(dimension_semantics=("parallel", "parallel"))
    if vmem_limit_bytes is not None:
        cp_kwargs["vmem_limit_bytes"] = int(vmem_limit_bytes)

    out2 = pl.pallas_call(
        _add_pe_kernel,
        out_shape=jax.ShapeDtypeStruct((B, N), out_dtype),
        grid_spec=pltpu.PrefetchScalarGridSpec(
            num_scalar_prefetch=0,
            grid=grid,
            in_specs=[
                pl.BlockSpec((tb, tc), lambda c, r: (r, c)),
                # pe block index constant along the inner (batch) axis -> its DMA
                # is reused across batch tiles; pe is read from HBM exactly once.
                pl.BlockSpec((1, tc), lambda c, r: (0, c)),
            ],
            out_specs=pl.BlockSpec((tb, tc), lambda c, r: (r, c)),
        ),
        compiler_params=pltpu.CompilerParams(**cp_kwargs),
    )(x2, pe2)

    return out2.reshape(B, S, D)


if __name__ == "__main__":
    # Module config
    max_seq_length = 16
    d_model = 32

    # Input config (x is (batch, seq, d_model), batch-first like the PyTorch module)
    batch = 2
    seq = 8

    key = jax.random.PRNGKey(0)
    k_x, k_pe = jax.random.split(key)

    x = jax.random.normal(k_x, (batch, seq, d_model), dtype=jnp.float32)
    # Deterministic init matching nn.init.normal_(mean=0, std=0.02)
    positional_encoding = 0.02 * jax.random.normal(
        k_pe, (max_seq_length, d_model), dtype=jnp.float32
    )

    ref = x + positional_encoding[:seq, :]

    # 1) Force the Pallas path (demo shapes are tiny, so the default heuristic
    #    would take the plain-JAX fast path).
    out = learnable_positional_encoding_forward(
        x, positional_encoding, min_pallas_bytes=0
    )
    out = jax.block_until_ready(out)
    assert out.shape == (batch, seq, d_model)
    assert out.dtype == ref.dtype
    assert jnp.allclose(out, ref, atol=1e-6), "pallas path mismatch vs reference"

    # 2) Default heuristic (tiny input -> fast path); semantics must be identical.
    out_fast = jax.block_until_ready(
        learnable_positional_encoding_forward(x, positional_encoding)
    )
    assert jnp.allclose(out_fast, ref, atol=1e-6), "fast path mismatch vs reference"

    print("KERNEL_OK")
</pallas_src>

<mosaic_0001>
module attributes {stable_mosaic.version = 11 : i64} {
  func.func @_add_pe_kernel(%arg0: i32, %arg1: i32, %arg2: memref<2x256xf32, #tpu.memory_space<vmem>>, %arg3: memref<1x256xf32, #tpu.memory_space<vmem>>, %arg4: memref<2x256xf32, #tpu.memory_space<vmem>>) attributes {dimension_semantics = [#tpu.dimension_semantics<parallel>, #tpu.dimension_semantics<parallel>], iteration_bounds = array<i64: 1, 1>, scalar_prefetch = 0 : i64, scratch_operands = 0 : i64, tpu.core_type = #tpu.core_type<tc>, window_params = [{transform_indices = @transform_0, window_bounds = array<i64: 2, 256>}, {transform_indices = @transform_1, window_bounds = array<i64: 1, 256>}, {transform_indices = @transform_2, window_bounds = array<i64: 2, 256>}]} {
    %c0 = arith.constant 0 : index
    %c0_0 = arith.constant 0 : index
    %0 = vector.load %arg2[%c0, %c0_0] : memref<2x256xf32, #tpu.memory_space<vmem>>, vector<2x256xf32>
    %c0_1 = arith.constant 0 : index
    %c0_2 = arith.constant 0 : index
    %1 = vector.load %arg3[%c0_1, %c0_2] : memref<1x256xf32, #tpu.memory_space<vmem>>, vector<1x256xf32>
    %2 = vector.broadcast %1 : vector<1x256xf32> to vector<2x256xf32>
    %3 = arith.addf %0, %2 : vector<2x256xf32>
    %c0_3 = arith.constant 0 : index
    %c0_4 = arith.constant 0 : index
    %4 = vector.load %arg4[%c0_3, %c0_4] : memref<2x256xf32, #tpu.memory_space<vmem>>, vector<2x256xf32>
    tpu.vector_store %arg4[%c0_3, %c0_4], %3 {strides = array<i32>} : memref<2x256xf32, #tpu.memory_space<vmem>>, vector<2x256xf32>,
    return
  }
  func.func @transform_0(%arg0: i32, %arg1: i32) -> (i32, i32) {
    %c0_i32 = arith.constant 0 : i32
    return %arg1, %arg0 : i32, i32
  }
  func.func @transform_1(%arg0: i32, %arg1: i32) -> (i32, i32) {
    %c0_i32 = arith.constant 0 : i32
    %c0_i32_0 = arith.constant 0 : i32
    return %c0_i32, %arg0 : i32, i32
  }
  func.func @transform_2(%arg0: i32, %arg1: i32) -> (i32, i32) {
    %c0_i32 = arith.constant 0 : i32
    return %arg1, %arg0 : i32, i32
  }
}

</mosaic_0001>

<bundles_post_ra>
// kernel: tpu_custom_call.1
= control target key start
LH: loop header
LB: loop body
LE: loop exit
PB: predicated region body
PF: predicated region fallthrough
CT: control target
= control target key end

     0   :  { %7 = vsyncpa [#allocation3], 0  ;;  %s157_s0 = inlined_call_operand.hbm [shape: f32[2,256], index: 0, kind: input, shape index: {}]   ;;  %s158_s1 = inlined_call_operand.vmem [shape: f32[1,256], index: 1, kind: input, shape index: {}]   ;;  %s159_s2 = inlined_call_operand.hbm [shape: f32[2,256], index: 2, kind: output, shape index: {}]  }
   0x1   :  { %8 = vsyncpa [#allocation4], 0  ;;  %s112_s9 = smov [#allocation2]   ;;  %s64_s13 = scalar_lea.hbm %s157_s0, 64 }
   0x2   :  { %s15_s10 = sshll.u32 %s112_s9, 4  ;;  %p65_p0 = scmp.ne.s32.totalorder %s157_s0, %s64_s13  ;;  %s16_s10 = int_to_ptr.vmem [resolvable:$true] %s15_s10 }
   0x3   :  { %p68_p1 = scmp.lt.u32.totalorder %s64_s13, %s157_s0 }
   0x5   :  { %p70_p2 = pnand %p68_p1, %p65_p0 }
   0x7   :  { %73 = shalt.err (!%p70_p2)
}
   0x8   :  { %s74_s18 = scalar_lea.vmem %s16_s10, 64  ;;  %p79_p4 = scmp.lt.s32.totalorder %s16_s10, %s16_s10 }
   0x9   :  { %p75_p3 = scmp.ne.s32.totalorder %s16_s10, %s74_s18  ;;  %p80_p5 = scmp.lt.s32.totalorder %s74_s18, %s74_s18 }
   0xb   :  { %p81_p6 = por %p80_p5, %p79_p4 }
   0xd   :  { %p82_p7 = pnand %p81_p6, %p75_p3 }
   0xf   :  { %85 = shalt.err (!%p82_p7)
}
  0x10   :  { %18 = dma.hbm_to_vmem [thread:$0]  %s157_s0, 64, %s16_s10, [#allocation3]  }
  0x11   :  { %108 = dma.done.wait [#allocation3], 64  }
  0x12   :  { %109 = vsyncadd [#allocation3], 4294967232  ;;  %v27_v0 = vlaneseq  ;;  %v113_v1 = vmov 1983009808   ;;  %v25_v7 = vld [vmem:[%s158_s1] sm:$0x3] }
  0x13   :  { %v37_v2 = vunpack.c.l.s4 %v113_v1  ;;  %v24_v12 = vld [vmem:[#allocation2] sm:$0xf]  ;;  %s114_s23 = smov [#allocation5]  }
  0x14   :  { %v28_v3 = vshrl.u32 %v27_v0, 7  ;;  %s52_s0 = sshll.u32 %s114_s23, 4  ;;  %s53_s0 = int_to_ptr.vmem [resolvable:$true] %s52_s0 }
  0x15   :  { %v38_v6 = vunpack.c.0.s8 %v37_v2  ;;  %s86_s24 = scalar_lea.vmem %s53_s0, 64  ;;  %p91_p9 = scmp.lt.s32.totalorder %s53_s0, %s53_s0 }
  0x16   :  { %v29_v4 = vsub.s32 0, %v28_v3  ;;  %v33_v5 = vsub.s32 1, %v28_v3  ;;  %p87_p8 = scmp.ne.s32.totalorder %s53_s0, %s86_s24  ;;  %p92_p10 = scmp.lt.s32.totalorder %s86_s24, %s86_s24 }
  0x17   :  { %v41_v10 = vsub.s32 %v38_v6, %v28_v3 }
  0x18   :  { %v30_v8 = vrot.slane %v25_v7, %v29_v4  ;;  %v34_v9 = vrot.slane %v25_v7, %v33_v5  ;;  %p93_p11 = por %p92_p10, %p91_p9 }
  0x1a   :  { %v35_v11 = vcombine.low %v30_v8, %v34_v9  ;;  %p94_p12 = pnand %p93_p11, %p87_p8 }
  0x1c   :  { %v42_v13 = vrot.slane %v35_v11, %v41_v10 }
  0x1e   :  { %v44_v14 = vadd.f32 %v42_v13, %v24_v12 }
  0x20   :  { %45 = vst [vmem:[#allocation5] sm:$0xf] %v44_v14 }
  0x21   :  { %97 = shalt.err (!%p94_p12)
}
  0x22   :  { %s98_s26 = scalar_lea.hbm %s159_s2, 64 }
  0x23   :  { %p99_p13 = scmp.ne.s32.totalorder %s159_s2, %s98_s26  ;;  %p102_p0 = scmp.lt.u32.totalorder %s98_s26, %s159_s2 }
  0x25   :  { %p104_p1 = pnand %p102_p0, %p99_p13 }
  0x27   :  { %107 = shalt.err (!%p104_p1)
}
  0x28   :  { %55 = dma.vmem_to_hbm [thread:$0]  %s53_s0, 64, %s159_s2, [#allocation4]  }
  0x29   :  { %110 = dma.done.wait [#allocation4], 64  }
  0x2a   :  { %111 = vsyncadd [#allocation4], 4294967232 }
  0x2b   :  { %59 = vsyncpa [#allocation3], 1 }
  0x2c   :  { %60 = vsyncpa [#allocation4], 1 }

</bundles_post_ra>
